<compile_context>
chip_gen: v5e
topology: v5e:2x2
jax: 0.10.0
libtpu: 0.0.40
codegen_flags: <defaults>
</compile_context>

<pallas_src>
import functools

import jax
import jax.numpy as jnp
from jax import lax
from jax.experimental import pallas as pl
from jax.experimental.pallas import tpu as pltpu

HWGQ_STEPS = {1: 0.799, 2: 0.538, 3: 0.3217, 4: 0.185, 5: 0.104, 6: 0.058, 7: 0.033, 8: 0.019}
GAUSSIAN_STEPS = {1: 1.596, 2: 0.996, 3: 0.586, 4: 0.336, 5: 0.19, 6: 0.106, 7: 0.059, 8: 0.032}

ABITS = (1, 2)   # default abits of MixActivConv2d
WBITS = (1, 2)   # default wbits of MixActivConv2d

_LANE = 1024     # flattened activation lane width (8 * 128), lane-dense


def _round_up(a, b):
    return (a + b - 1) // b * b


# ---------------------------------------------------------------------------
# Pallas kernel 1: mixed HWGQ activation quantization (elementwise, pre-im2col)
# ---------------------------------------------------------------------------
def _mix_hwgq_kernel(ascale_ref, x_ref, o_ref):
    # ascale_ref: SMEM (nb_a,)  fused scales  sw_a[i] * hwgq_step_i
    # x_ref:      VMEM (TR, LANE) f32
    # o_ref:      VMEM (TR, LANE) bf16
    x = x_ref[...]
    acc = None
    for i, bit in enumerate(ABITS):
        step = HWGQ_STEPS[bit]
        clip_thr = step * float(2 ** bit - 1)
        y = jnp.clip(x, 0.0, clip_thr)
        # round-half-to-even == torch.round; scale fused: round(y/step) * step * sw
        t = jnp.round(y * (1.0 / step)) * ascale_ref[i]
        acc = t if acc is None else acc + t
    o_ref[...] = acc.astype(o_ref.dtype)


# ---------------------------------------------------------------------------
# Pallas kernel 2: fused gaussian weight quant+mix + tiled matmul (bf16 MXU, f32 acc)
# ---------------------------------------------------------------------------
def _wmix_matmul_kernel(wparams_ref, a_ref, w_ref, o_ref, acc_ref):
    # wparams_ref: SMEM (2*nb_w,) = [1/step_0.., sw_w[i]*step_i ..]
    # a_ref:  VMEM (TM, TK)        bf16 quantized-activation patches
    # w_ref:  VMEM (nb_w, TK, TC)  f32 raw weight branches, already (K, Cout) layout
    # o_ref:  VMEM (TM, TC)        f32
    # acc_ref: VMEM scratch (TM, TC) f32
    k = pl.program_id(2)

    @pl.when(k == 0)
    def _():
        acc_ref[...] = jnp.zeros_like(acc_ref)

    nb = len(WBITS)
    wmix = None
    for i, bit in enumerate(WBITS):
        inv_step = wparams_ref[i]
        scale = wparams_ref[nb + i]          # sw_w[i] * step_i
        lvls = float(2 ** bit) / 2.0
        q = jnp.clip(jnp.round(w_ref[i] * inv_step), -lvls, lvls - 1.0) * scale
        wmix = q if wmix is None else wmix + q

    acc_ref[...] += jnp.dot(a_ref[...], wmix.astype(jnp.bfloat16),
                            preferred_element_type=jnp.float32)

    @pl.when(k == pl.num_programs(2) - 1)
    def _():
        o_ref[...] = acc_ref[...].astype(o_ref.dtype)


# ---------------------------------------------------------------------------
# Wrapper (plain-JAX glue: softmax, std, im2col, padding, reshapes)
# ---------------------------------------------------------------------------
@functools.partial(jax.jit, static_argnames=("stride", "padding"))
def mix_activ_conv2d(x, weights, alpha_activ, alpha_weight, *, stride=1, padding=1):
    """Forward of MixActivConv2d (share_weight=False, bias=False, dilation=1, groups=1).

    x:        (N, Cin, H, W)  float32  NCHW
    weights:  (len(WBITS), Cout, Cin, kh, kw)  float32 (one conv weight per wbit branch)
    alpha_*:  (len(bits),)
    returns:  (N, Cout, Ho, Wo)  float32  NCHW
    """
    x = x.astype(jnp.float32)
    N, Cin, H, W = x.shape
    nb_w, Cout, _, kh, kw = weights.shape
    assert nb_w == len(WBITS)
    Ho = (H + 2 * padding - kh) // stride + 1
    Wo = (W + 2 * padding - kw) // stride + 1
    K = Cin * kh * kw
    M = N * Ho * Wo

    # softmax mixing coefficients (F.softmax(alpha, dim=0))
    sw_a = jax.nn.softmax(alpha_activ.astype(jnp.float32))
    sw_w = jax.nn.softmax(alpha_weight.astype(jnp.float32))

    # Fused activation scales: sw_a[i] * hwgq_step_i
    ascale = (sw_a * jnp.array([HWGQ_STEPS[b] for b in ABITS], jnp.float32)).astype(jnp.float32)

    # Per-branch rescaled gaussian steps (torch .std() is unbiased -> ddof=1)
    steps = jnp.stack([GAUSSIAN_STEPS[bit] * jnp.std(weights[i].astype(jnp.float32), ddof=1)
                       for i, bit in enumerate(WBITS)]).astype(jnp.float32)
    wparams = jnp.concatenate([1.0 / steps, sw_w * steps]).astype(jnp.float32)  # (2*nb_w,)

    # --- Pallas kernel 1: mixed HWGQ quantization of x, lane-dense flattened, bf16 out ---
    total = N * Cin * H * W
    rows = pl.cdiv(total, _LANE)
    TR = 256 if rows >= 256 else _round_up(rows, 16)
    rows_pad = _round_up(rows, TR)
    x2d = jnp.pad(x.reshape(-1), (0, rows_pad * _LANE - total)).reshape(rows_pad, _LANE)
    act2d = pl.pallas_call(
        _mix_hwgq_kernel,
        out_shape=jax.ShapeDtypeStruct((rows_pad, _LANE), jnp.bfloat16),
        grid=(rows_pad // TR,),
        in_specs=[
            pl.BlockSpec(memory_space=pltpu.MemorySpace.SMEM),
            pl.BlockSpec((TR, _LANE), lambda r: (r, 0)),
        ],
        out_specs=pl.BlockSpec((TR, _LANE), lambda r: (r, 0)),
        compiler_params=pltpu.CompilerParams(dimension_semantics=("parallel",)),
    )(ascale, x2d)
    act = act2d.reshape(-1)[:total].reshape(N, Cin, H, W)   # bf16, same values as torch mix_activ

    # --- im2col glue (bf16).  Torch quantizes first, conv pads with zeros -> same order here.
    # K ordering = (c, kh, kw), matching the weight reshape below.
    # TODO(synk): gather the kh*kw shifted windows inside the matmul kernel (pl.ANY + manual
    # DMA) to avoid materializing the kh*kw-expanded patches through HBM entirely.
    xp = jnp.pad(act, ((0, 0), (0, 0), (padding, padding), (padding, padding)))
    cols = []
    for i in range(kh):
        for j in range(kw):
            cols.append(xp[:, :, i:i + stride * Ho:stride, j:j + stride * Wo:stride])
    patches = jnp.stack(cols, axis=2).transpose(0, 3, 4, 1, 2).reshape(M, K)

    # --- tile sizes: big M tiles (no TM=M fallback), lane-dense padded Cout, optional K tiling.
    if M >= 4096:
        TM = 1024
    elif M >= 1024:
        TM = 512
    elif M >= 512:
        TM = 256
    else:
        TM = _round_up(M, 16)
    M_pad = _round_up(M, TM)
    TC = 256 if Cout > 128 else 128
    Cout_pad = _round_up(Cout, TC)
    if K <= 1024:
        TK, K_pad = K, K
    else:
        TK = 512
        K_pad = _round_up(K, TK)

    patches = jnp.pad(patches, ((0, M_pad - M), (0, K_pad - K)))            # bf16 (M_pad, K_pad)
    # weights -> (nb, K, Cout) with K=(c,kh,kw); zero padding is exact (quantize(0) == 0).
    w3d = weights.astype(jnp.float32).transpose(0, 2, 3, 4, 1).reshape(nb_w, K, Cout)
    w3d = jnp.pad(w3d, ((0, 0), (0, K_pad - K), (0, Cout_pad - Cout)))      # f32 (nb, K_pad, C_pad)

    grid = (M_pad // TM, Cout_pad // TC, K_pad // TK)
    out_flat = pl.pallas_call(
        _wmix_matmul_kernel,
        out_shape=jax.ShapeDtypeStruct((M_pad, Cout_pad), jnp.float32),
        grid=grid,
        in_specs=[
            pl.BlockSpec(memory_space=pltpu.MemorySpace.SMEM),
            pl.BlockSpec((TM, TK), lambda m, c, k: (m, k)),
            pl.BlockSpec((nb_w, TK, TC), lambda m, c, k: (0, k, c)),
        ],
        out_specs=pl.BlockSpec((TM, TC), lambda m, c, k: (m, c)),
        scratch_shapes=[pltpu.VMEM((TM, TC), jnp.float32)],
        compiler_params=pltpu.CompilerParams(
            dimension_semantics=("parallel", "parallel", "arbitrary"),
            vmem_limit_bytes=48 * 1024 * 1024),
    )(wparams, patches, w3d)

    # (M, Cout) -> (N, Ho, Wo, Cout) -> NCHW (module contract is NCHW)
    out = out_flat[:M, :Cout].reshape(N, Ho, Wo, Cout).transpose(0, 3, 1, 2)

    # Buffers updated by the torch forward (memory_size, size_product, in_width) are
    # host-side bookkeeping with no effect on the output; intentionally omitted.
    return out


# ---------------------------------------------------------------------------
# Pure-JAX references for verification
# ---------------------------------------------------------------------------
def _reference_f32(x, weights, alpha_activ, alpha_weight, *, stride=1, padding=1):
    """Faithful f32 mirror of the PyTorch module."""
    sw_a = jax.nn.softmax(alpha_activ)
    sw_w = jax.nn.softmax(alpha_weight)
    act = jnp.zeros_like(x)
    for i, bit in enumerate(ABITS):
        step = HWGQ_STEPS[bit]
        clip_thr = step * float(2 ** bit - 1)
        y = jnp.clip(x, 0.0, clip_thr)
        act = act + sw_a[i] * (jnp.round(y / step) * step)
    wmix = jnp.zeros_like(weights[0])
    for i, bit in enumerate(WBITS):
        step = GAUSSIAN_STEPS[bit] * jnp.std(weights[i], ddof=1)
        lvls = float(2 ** bit) / 2.0
        wmix = wmix + sw_w[i] * (jnp.clip(jnp.round(weights[i] / step), -lvls, lvls - 1.0) * step)
    return lax.conv_general_dilated(
        act, wmix, (stride, stride), ((padding, padding), (padding, padding)),
        dimension_numbers=("NCHW", "OIHW", "NCHW"))


def _reference_bf16(x, weights, alpha_activ, alpha_weight, *, stride=1, padding=1):
    """Structural reference using the same fused-scale math and bf16 MXU inputs as the kernel."""
    sw_a = jax.nn.softmax(alpha_activ.astype(jnp.float32))
    sw_w = jax.nn.softmax(alpha_weight.astype(jnp.float32))
    ascale = sw_a * jnp.array([HWGQ_STEPS[b] for b in ABITS], jnp.float32)
    act = None
    for i, bit in enumerate(ABITS):
        step = HWGQ_STEPS[bit]
        clip_thr = step * float(2 ** bit - 1)
        y = jnp.clip(x, 0.0, clip_thr)
        t = jnp.round(y * (1.0 / step)) * ascale[i]
        act = t if act is None else act + t
    act = act.astype(jnp.bfloat16)
    steps = jnp.stack([GAUSSIAN_STEPS[bit] * jnp.std(weights[i].astype(jnp.float32), ddof=1)
                       for i, bit in enumerate(WBITS)]).astype(jnp.float32)
    inv_steps = 1.0 / steps
    wscale = sw_w * steps
    wmix = None
    for i, bit in enumerate(WBITS):
        lvls = float(2 ** bit) / 2.0
        q = jnp.clip(jnp.round(weights[i] * inv_steps[i]), -lvls, lvls - 1.0) * wscale[i]
        wmix = q if wmix is None else wmix + q
    wmix = wmix.astype(jnp.bfloat16)
    return lax.conv_general_dilated(
        act, wmix, (stride, stride), ((padding, padding), (padding, padding)),
        dimension_numbers=("NCHW", "OIHW", "NCHW"),
        preferred_element_type=jnp.float32)


if __name__ == "__main__":
    # MixActivConv2d(inplane=4, outplane=8, kernel_size=3, stride=1, padding=1, bias=False)
    N, Cin, H, W = 2, 4, 16, 16
    Cout, kh, kw = 8, 3, 3

    key = jax.random.PRNGKey(0)
    kx, kw0, kw1 = jax.random.split(key, 3)
    x = jax.random.normal(kx, (N, Cin, H, W), dtype=jnp.float32)
    # one independent conv weight per wbit branch (MixQuantConv2d, share_weight=False)
    weights = jnp.stack([
        0.1 * jax.random.normal(kw0, (Cout, Cin, kh, kw), dtype=jnp.float32),
        0.1 * jax.random.normal(kw1, (Cout, Cin, kh, kw), dtype=jnp.float32),
    ])
    # alpha parameters are filled with 0.01 in __init__
    alpha_activ = jnp.full((len(ABITS),), 0.01, dtype=jnp.float32)
    alpha_weight = jnp.full((len(WBITS),), 0.01, dtype=jnp.float32)

    out = mix_activ_conv2d(x, weights, alpha_activ, alpha_weight, stride=1, padding=1)
    out = jax.block_until_ready(out)
    assert out.shape == (N, Cout, H, W), out.shape

    # Tight check vs a reference that uses identical quant math + bf16 MXU inputs.
    ref_bf = _reference_bf16(x, weights, alpha_activ, alpha_weight, stride=1, padding=1)
    err_bf = float(jnp.max(jnp.abs(out - ref_bf)))
    assert jnp.allclose(out, ref_bf, atol=5e-3, rtol=5e-3), err_bf

    # Looser check vs the faithful f32 mirror of the PyTorch module (bf16 matmul inputs).
    ref_32 = _reference_f32(x, weights, alpha_activ, alpha_weight, stride=1, padding=1)
    err_32 = float(jnp.max(jnp.abs(out - ref_32)))
    assert jnp.allclose(out, ref_32, atol=3e-2, rtol=3e-2), err_32

    print("KERNEL_OK")
</pallas_src>

<mosaic_0001>
module attributes {stable_mosaic.version = 11 : i64} {
  func.func @_mix_hwgq_kernel(%arg0: i32, %arg1: memref<2xf32, #tpu.memory_space<smem>>, %arg2: memref<16x1024xf32, #tpu.memory_space<vmem>>, %arg3: memref<16x1024xbf16, #tpu.memory_space<vmem>>) attributes {dimension_semantics = [#tpu.dimension_semantics<parallel>], iteration_bounds = array<i64: 1>, scalar_prefetch = 0 : i64, scratch_operands = 0 : i64, tpu.core_type = #tpu.core_type<tc>, window_params = [{transform_indices = @transform_0, window_bounds = array<i64: 2>}, {transform_indices = @transform_1, window_bounds = array<i64: 16, 1024>}, {transform_indices = @transform_2, window_bounds = array<i64: 16, 1024>}]} {
    %c0 = arith.constant 0 : index
    %c0_0 = arith.constant 0 : index
    %0 = vector.load %arg2[%c0, %c0_0] : memref<16x1024xf32, #tpu.memory_space<vmem>>, vector<16x1024xf32>
    %cst = arith.constant 0.000000e+00 : f32
    %cst_1 = arith.constant 7.990000e-01 : f32
    %1 = vector.broadcast %cst : f32 to vector<16x1024xf32>
    %2 = arith.maximumf %1, %0 : vector<16x1024xf32>
    %3 = vector.broadcast %cst_1 : f32 to vector<16x1024xf32>
    %4 = arith.minimumf %3, %2 : vector<16x1024xf32>
    %cst_2 = arith.constant 1.2515645 : f32
    %5 = vector.broadcast %cst_2 : f32 to vector<16x1024xf32>
    %6 = arith.mulf %4, %5 : vector<16x1024xf32>
    %7 = math.roundeven %6 : vector<16x1024xf32>
    %c0_3 = arith.constant 0 : index
    %8 = memref.load %arg1[%c0_3] : memref<2xf32, #tpu.memory_space<smem>>
    %9 = vector.broadcast %8 : f32 to vector<16x1024xf32>
    %10 = arith.mulf %7, %9 : vector<16x1024xf32>
    %cst_4 = arith.constant 0.000000e+00 : f32
    %cst_5 = arith.constant 1.614000e+00 : f32
    %11 = vector.broadcast %cst_4 : f32 to vector<16x1024xf32>
    %12 = arith.maximumf %11, %0 : vector<16x1024xf32>
    %13 = vector.broadcast %cst_5 : f32 to vector<16x1024xf32>
    %14 = arith.minimumf %13, %12 : vector<16x1024xf32>
    %cst_6 = arith.constant 1.85873604 : f32
    %15 = vector.broadcast %cst_6 : f32 to vector<16x1024xf32>
    %16 = arith.mulf %14, %15 : vector<16x1024xf32>
    %17 = math.roundeven %16 : vector<16x1024xf32>
    %c1 = arith.constant 1 : index
    %18 = memref.load %arg1[%c1] : memref<2xf32, #tpu.memory_space<smem>>
    %19 = vector.broadcast %18 : f32 to vector<16x1024xf32>
    %20 = arith.mulf %17, %19 : vector<16x1024xf32>
    %21 = arith.addf %10, %20 : vector<16x1024xf32>
    %22 = arith.truncf %21 : vector<16x1024xf32> to vector<16x1024xbf16>
    %c0_7 = arith.constant 0 : index
    %c0_8 = arith.constant 0 : index
    %23 = vector.load %arg3[%c0_7, %c0_8] : memref<16x1024xbf16, #tpu.memory_space<vmem>>, vector<16x1024xbf16>
    tpu.vector_store %arg3[%c0_7, %c0_8], %22 {strides = array<i32>} : memref<16x1024xbf16, #tpu.memory_space<vmem>>, vector<16x1024xbf16>,
    return
  }
  func.func @transform_0(%arg0: i32) -> i32 {
    %c0_i32 = arith.constant 0 : i32
    %c0_i32_0 = arith.constant 0 : i32
    return %c0_i32 : i32
  }
  func.func @transform_1(%arg0: i32) -> (i32, i32) {
    %c0_i32 = arith.constant 0 : i32
    %c0_i32_0 = arith.constant 0 : i32
    return %arg0, %c0_i32 : i32, i32
  }
  func.func @transform_2(%arg0: i32) -> (i32, i32) {
    %c0_i32 = arith.constant 0 : i32
    %c0_i32_0 = arith.constant 0 : i32
    return %arg0, %c0_i32 : i32, i32
  }
}

module attributes {stable_mosaic.version = 11 : i64} {
  func.func @_wmix_matmul_kernel(%arg0: i32, %arg1: i32, %arg2: i32, %arg3: memref<4xf32, #tpu.memory_space<smem>>, %arg4: memref<256x36xbf16, #tpu.memory_space<vmem>>, %arg5: memref<2x36x128xf32, #tpu.memory_space<vmem>>, %arg6: memref<256x128xf32, #tpu.memory_space<vmem>>, %arg7: memref<256x128xf32, #tpu.memory_space<vmem>>) attributes {dimension_semantics = [#tpu.dimension_semantics<parallel>, #tpu.dimension_semantics<parallel>, #tpu.dimension_semantics<arbitrary>], iteration_bounds = array<i64: 2, 1, 1>, scalar_prefetch = 0 : i64, scratch_operands = 1 : i64, tpu.core_type = #tpu.core_type<tc>, window_params = [{transform_indices = @transform_0, window_bounds = array<i64: 4>}, {transform_indices = @transform_1, window_bounds = array<i64: 256, 36>}, {transform_indices = @transform_2, window_bounds = array<i64: 2, 36, 128>}, {transform_indices = @transform_3, window_bounds = array<i64: 256, 128>}]} {
    %c0_i32 = arith.constant 0 : i32
    %0 = arith.cmpi eq, %arg2, %c0_i32 : i32
    %1 = arith.extui %0 : i1 to i32
    %c0_i32_0 = arith.constant 0 : i32
    %2 = arith.cmpi ne, %1, %c0_i32_0 : i32
    scf.if %2 {
      %cst_19 = arith.constant 0.000000e+00 : f32
      %39 = vector.broadcast %cst_19 : f32 to vector<256x128xf32>
      %c0_20 = arith.constant 0 : index
      %c0_21 = arith.constant 0 : index
      %40 = vector.load %arg7[%c0_20, %c0_21] : memref<256x128xf32, #tpu.memory_space<vmem>>, vector<256x128xf32>
      tpu.vector_store %arg7[%c0_20, %c0_21], %39 {strides = array<i32>} : memref<256x128xf32, #tpu.memory_space<vmem>>, vector<256x128xf32>,
    } else {
    }
    %c0 = arith.constant 0 : index
    %3 = memref.load %arg3[%c0] : memref<4xf32, #tpu.memory_space<smem>>
    %c2 = arith.constant 2 : index
    %4 = memref.load %arg3[%c2] : memref<4xf32, #tpu.memory_space<smem>>
    %c0_1 = arith.constant 0 : index
    %c0_2 = arith.constant 0 : index
    %c0_3 = arith.constant 0 : index
    %5 = vector.load %arg5[%c0_1, %c0_2, %c0_3] : memref<2x36x128xf32, #tpu.memory_space<vmem>>, vector<1x36x128xf32>
    %6 = vector.shape_cast %5 : vector<1x36x128xf32> to vector<36x128xf32>
    %7 = vector.broadcast %3 : f32 to vector<36x128xf32>
    %8 = arith.mulf %6, %7 : vector<36x128xf32>
    %9 = math.roundeven %8 : vector<36x128xf32>
    %cst = arith.constant -1.000000e+00 : f32
    %cst_4 = arith.constant 0.000000e+00 : f32
    %10 = vector.broadcast %cst : f32 to vector<36x128xf32>
    %11 = arith.maximumf %10, %9 : vector<36x128xf32>
    %12 = vector.broadcast %cst_4 : f32 to vector<36x128xf32>
    %13 = arith.minimumf %12, %11 : vector<36x128xf32>
    %14 = vector.broadcast %4 : f32 to vector<36x128xf32>
    %15 = arith.mulf %13, %14 : vector<36x128xf32>
    %c1 = arith.constant 1 : index
    %16 = memref.load %arg3[%c1] : memref<4xf32, #tpu.memory_space<smem>>
    %c3 = arith.constant 3 : index
    %17 = memref.load %arg3[%c3] : memref<4xf32, #tpu.memory_space<smem>>
    %c1_5 = arith.constant 1 : index
    %c0_6 = arith.constant 0 : index
    %c0_7 = arith.constant 0 : index
    %18 = vector.load %arg5[%c1_5, %c0_6, %c0_7] : memref<2x36x128xf32, #tpu.memory_space<vmem>>, vector<1x36x128xf32>
    %19 = vector.shape_cast %18 : vector<1x36x128xf32> to vector<36x128xf32>
    %20 = vector.broadcast %16 : f32 to vector<36x128xf32>
    %21 = arith.mulf %19, %20 : vector<36x128xf32>
    %22 = math.roundeven %21 : vector<36x128xf32>
    %cst_8 = arith.constant -2.000000e+00 : f32
    %cst_9 = arith.constant 1.000000e+00 : f32
    %23 = vector.broadcast %cst_8 : f32 to vector<36x128xf32>
    %24 = arith.maximumf %23, %22 : vector<36x128xf32>
    %25 = vector.broadcast %cst_9 : f32 to vector<36x128xf32>
    %26 = arith.minimumf %25, %24 : vector<36x128xf32>
    %27 = vector.broadcast %17 : f32 to vector<36x128xf32>
    %28 = arith.mulf %26, %27 : vector<36x128xf32>
    %29 = arith.addf %15, %28 : vector<36x128xf32>
    %c0_10 = arith.constant 0 : index
    %c0_11 = arith.constant 0 : index
    %30 = vector.load %arg7[%c0_10, %c0_11] : memref<256x128xf32, #tpu.memory_space<vmem>>, vector<256x128xf32>
    %c0_12 = arith.constant 0 : index
    %c0_13 = arith.constant 0 : index
    %31 = vector.load %arg4[%c0_12, %c0_13] : memref<256x36xbf16, #tpu.memory_space<vmem>>, vector<256x36xbf16>
    %32 = arith.truncf %29 : vector<36x128xf32> to vector<36x128xbf16>
    %cst_14 = arith.constant dense<0.000000e+00> : vector<256x128xf32>
    %33 = tpu.matmul %31, %32, %cst_14 {dimension_numbers = #tpu.dot_dimension_numbers<[1], [0], [0], [1], [0, 0, 1, 1], [], []>} : vector<256x36xbf16>, vector<36x128xbf16>, vector<256x128xf32> -> vector<256x128xf32>
    %34 = arith.addf %30, %33 : vector<256x128xf32>
    %c0_15 = arith.constant 0 : index
    %c0_16 = arith.constant 0 : index
    %35 = vector.load %arg7[%c0_15, %c0_16] : memref<256x128xf32, #tpu.memory_space<vmem>>, vector<256x128xf32>
    tpu.vector_store %arg7[%c0_15, %c0_16], %34 {strides = array<i32>} : memref<256x128xf32, #tpu.memory_space<vmem>>, vector<256x128xf32>,
    %c0_i32_17 = arith.constant 0 : i32
    %36 = arith.cmpi eq, %arg2, %c0_i32_17 : i32
    %37 = arith.extui %36 : i1 to i32
    %c0_i32_18 = arith.constant 0 : i32
    %38 = arith.cmpi ne, %37, %c0_i32_18 : i32
    scf.if %38 {
      %c0_19 = arith.constant 0 : index
      %c0_20 = arith.constant 0 : index
      %39 = vector.load %arg7[%c0_19, %c0_20] : memref<256x128xf32, #tpu.memory_space<vmem>>, vector<256x128xf32>
      %c0_21 = arith.constant 0 : index
      %c0_22 = arith.constant 0 : index
      %40 = vector.load %arg6[%c0_21, %c0_22] : memref<256x128xf32, #tpu.memory_space<vmem>>, vector<256x128xf32>
      tpu.vector_store %arg6[%c0_21, %c0_22], %39 {strides = array<i32>} : memref<256x128xf32, #tpu.memory_space<vmem>>, vector<256x128xf32>,
    } else {
    }
    return
  }
  func.func @transform_0(%arg0: i32, %arg1: i32, %arg2: i32) -> i32 {
    %c0_i32 = arith.constant 0 : i32
    %c0_i32_0 = arith.constant 0 : i32
    return %c0_i32 : i32
  }
  func.func @transform_1(%arg0: i32, %arg1: i32, %arg2: i32) -> (i32, i32) {
    %c0_i32 = arith.constant 0 : i32
    return %arg0, %arg2 : i32, i32
  }
  func.func @transform_2(%arg0: i32, %arg1: i32, %arg2: i32) -> (i32, i32, i32) {
    %c0_i32 = arith.constant 0 : i32
    %c0_i32_0 = arith.constant 0 : i32
    return %c0_i32, %arg2, %arg1 : i32, i32, i32
  }
  func.func @transform_3(%arg0: i32, %arg1: i32, %arg2: i32) -> (i32, i32) {
    %c0_i32 = arith.constant 0 : i32
    return %arg0, %arg1 : i32, i32
  }
}

</mosaic_0001>

<bundles_post_ra>
// kernel: mix_activ_conv2d.2
= control target key start
LH: loop header
LB: loop body
LE: loop exit
PB: predicated region body
PF: predicated region fallthrough
CT: control target
= control target key end

     0   :  { %7 = vsyncpa [#allocation3], 0  ;;  %s497_s12 = smov [#allocation2]   ;;  %s837_s0 = inlined_call_operand.vmem [shape: f32[2], index: 0, kind: input, shape index: {}]   ;;  %s838_s1 = inlined_call_operand.vmem [shape: f32[16,1024], index: 1, kind: input, shape index: {}]   ;;  %s839_s2 = inlined_call_operand.vmem [shape: bf16[16,1024], index: 2, kind: output, shape index: {}]  }
   0x1   :  { %s13_s11 = sshll.u32 %s837_s0, 4  ;;  %s14_s11 = int_to_ptr.vmem [resolvable:$true] %s13_s11 }
   0x2   :  { %16 = dma.vmem_to_smem %s14_s11, 16, %s497_s12, [#allocation3]  }
   0x3   :  { %495 = dma.done.wait [#allocation3], 16  }
   0x4   :  { %496 = vsyncadd [#allocation3], 4294967280 }
   0x5   :  { %23 = sfence }
   0x6   :  { %v24_v0 = vld [vmem:[%s838_s1] sm:$0xff]  ;;  %v25_v1 = vld [vmem:[%s838_s1 + $0x8] sm:$0xff]  ;;  %s104_s17 = sld [smem:[#allocation2]]  ;;  %v525_v2 = vld [vmem:[%s838_s1 + $0x10] sm:$0xff] }
   0x7   :  { %v40_v3 = vmax.f32 %v24_v0, 0.0  ;;  %v41_v4 = vmax.f32 %v25_v1, 0.0  ;;  %v530_v5 = vld [vmem:[%s838_s1 + $0x18] sm:$0xff]  ;;  %v42_v6 = vmax.f32 %v525_v2, 0.0  ;;  %s533_s21 = sld [smem:[#allocation2 + $0x1]]  ;;  %v28_v59 = vld [vmem:[%s838_s1 + $0x20] sm:$0xff] }
   0x8   :  { %v43_v7 = vmax.f32 %v530_v5, 0.0 }
   0x9   :  { %v56_v8 = vmin.f32 %v40_v3, 0.799  ;;  %v57_v9 = vmin.f32 %v41_v4, 0.799  ;;  %v122_v10 = vmin.f32 %v40_v3, 1.614 }
   0xa   :  { %v123_v11 = vmin.f32 %v41_v4, 1.614  ;;  %v58_v12 = vmin.f32 %v42_v6, 0.799  ;;  %v59_v13 = vmin.f32 %v43_v7, 0.799 }
   0xb   :  { %v72_v14 = vmul.f32 1.2515645, %v56_v8  ;;  %v73_v15 = vmul.f32 1.2515645, %v57_v9  ;;  %v138_v16 = vmul.f32 1.858736, %v122_v10 }
   0xc   :  { %v538_v17 = vstv %s104_s17  ;;  %v139_v18 = vmul.f32 1.858736, %v123_v11  ;;  %v540_v22 = vmul.f32 1.2515645, %v58_v12  ;;  %v542_v26 = vmul.f32 1.2515645, %v59_v13 }
   0xd   :  { %v226_v19 = vand.u32 2147483647, %v72_v14  ;;  %v228_v20 = vcvt.f32.s32 %v72_v14  ;;  %v234_v21 = vand.u32 2147483647, %v73_v15  ;;  %v236_v23 = vcvt.f32.s32 %v73_v15  ;;  %v29_v4 = vld [vmem:[%s838_s1 + $0x28] sm:$0xff] }
   0xe   :  { %v354_v24 = vand.u32 2147483647, %v138_v16  ;;  %v356_v25 = vcvt.f32.s32 %v138_v16  ;;  %v231_v29 = vand.u32 2147483648, %v72_v14  ;;  %v239_v30 = vand.u32 2147483648, %v73_v15 }
   0xf   :  { %vm544_vm0 = vcmp.lt.f32.partialorder %v226_v19, 8388608.0  ;;  %v229_v28 = vcvt.s32.f32 %v228_v20  ;;  %v237_v31 = vcvt.s32.f32 %v236_v23  ;;  %v359_v33 = vand.u32 2147483648, %v138_v16 }
  0x10   :  { %v357_v32 = vcvt.s32.f32 %v356_v25  ;;  %v362_v34 = vand.u32 2147483647, %v139_v18  ;;  %vm548_vm1 = vcmp.lt.f32.partialorder %v234_v21, 8388608.0  ;;  %vm552_vm2 = vcmp.lt.f32.partialorder %v354_v24, 8388608.0 }
  0x11   :  { %v230_v35 = vand.u32 2147483647, %v229_v28  ;;  %v364_v38 = vcvt.f32.s32 %v139_v18  ;;  %v238_v39 = vand.u32 2147483647, %v237_v31  ;;  %v367_v41 = vand.u32 2147483648, %v139_v18 }
  0x12   :  { %v358_v40 = vand.u32 2147483647, %v357_v32  ;;  %v244_v42 = vcvt.f32.s32 %v540_v22  ;;  %v558_v45 = vstv %s533_s21  ;;  %v242_v46 = vand.u32 2147483647, %v540_v22 }
  0x13   :  { %v232_v43 = vor.u32 %v231_v29, %v230_v35  ;;  %v365_v44 = vcvt.s32.f32 %v364_v38  ;;  %v240_v47 = vor.u32 %v239_v30, %v238_v39  ;;  %vm561_vm3 = vcmp.lt.f32.partialorder %v362_v34, 8388608.0 }
  0x14   :  { %v360_v48 = vor.u32 %v359_v33, %v358_v40  ;;  %v245_v50 = vcvt.s32.f32 %v244_v42  ;;  %v247_v53 = vand.u32 2147483648, %v540_v22  ;;  %v252_v54 = vcvt.f32.s32 %v542_v26 }
  0x15   :  { %v233_v51 = vsel %vm544_vm0, %v232_v43, %v72_v14  ;;  %v366_v52 = vand.u32 2147483647, %v365_v44  ;;  %v241_v55 = vsel %vm548_vm1, %v240_v47, %v73_v15  ;;  %vm578_vm4 = vcmp.lt.f32.partialorder %v242_v46, 8388608.0 }
  0x16   :  { %v106_v56 = vmul.f32 %v233_v51, %v538_v17  ;;  %v361_v57 = vsel %vm552_vm2, %v360_v48, %v138_v16  ;;  %v246_v58 = vand.u32 2147483647, %v245_v50  ;;  %v250_v63 = vand.u32 2147483647, %v542_v26 }
  0x17   :  { %v368_v60 = vor.u32 %v367_v41, %v366_v52  ;;  %v172_v61 = vmul.f32 %v361_v57, %v558_v45  ;;  %v107_v0 = vmul.f32 %v241_v55, %v538_v17  ;;  %v253_v1 = vcvt.s32.f32 %v252_v54 }
  0x18   :  { %v255_v2 = vand.u32 2147483648, %v542_v26  ;;  %v124_v3 = vmin.f32 %v42_v6, 1.614  ;;  %v248_v9 = vor.u32 %v247_v53, %v246_v58  ;;  %v125_v10 = vmin.f32 %v43_v7, 1.614 }
  0x19   :  { %v369_v8 = vsel %vm561_vm3, %v368_v60, %v139_v18  ;;  %v44_v11 = vmax.f32 %v28_v59, 0.0  ;;  %v188_v13 = vadd.f32 %v172_v61, %v106_v56  ;;  %v254_v14 = vand.u32 2147483647, %v253_v1 }
  0x1a   :  { %v173_v12 = vmul.f32 %v369_v8, %v558_v45  ;;  %v140_v15 = vmul.f32 1.858736, %v124_v3  ;;  %vm593_vm5 = vcmp.lt.f32.partialorder %v250_v63, 8388608.0  ;;  %v141_v6 = vmul.f32 1.858736, %v125_v10 }
  0x1b   :  { %v45_v19 = vmax.f32 %v29_v4, 0.0  ;;  %v60_v20 = vmin.f32 %v44_v11, 0.799  ;;  %v256_v23 = vor.u32 %v255_v2, %v254_v14  ;;  %v249_v5 = vsel %vm578_vm4, %v248_v9, %v540_v22  ;;  %v30_v2 = vld [vmem:[%s838_s1 + $0x30] sm:$0xff]  ;;  %v31_v14 = vld [vmem:[%s838_s1 + $0x38] sm:$0xff] }
  0x1c   :  { %v189_v21 = vadd.f32 %v173_v12, %v107_v0  ;;  %v370_v18 = vand.u32 2147483647, %v140_v15  ;;  %v372_v24 = vcvt.f32.s32 %v140_v15  ;;  %v378_v7 = vand.u32 2147483647, %v141_v6 }
  0x1d   :  { %v380_v25 = vcvt.f32.s32 %v141_v6  ;;  %v257_v28 = vsel %vm593_vm5, %v256_v23, %v542_v26  ;;  %v375_v30 = vand.u32 2147483648, %v140_v15  ;;  %v383_v33 = vand.u32 2147483648, %v141_v6 }
  0x1e   :  { %v204_v27 = vpack.c.bf16 %v189_v21, %v188_v13  ;;  %v373_v29 = vcvt.s32.f32 %v372_v24  ;;  %vm603_vm6 = vcmp.lt.f32.partialorder %v370_v18, 8388608.0  ;;  %v61_v34 = vmin.f32 %v45_v19, 0.799 }
  0x1f   :  { %v381_v32 = vcvt.s32.f32 %v380_v25  ;;  %v108_v22 = vmul.f32 %v249_v5, %v538_v17  ;;  %v76_v36 = vmul.f32 1.2515645, %v60_v20  ;;  %v126_v37 = vmin.f32 %v44_v11, 1.614  ;;  %v645_v20 = vld [vmem:[%s838_s1 + $0x40] sm:$0xff]  ;;  %v656_v5 = vld [vmem:[%s838_s1 + $0x48] sm:$0xff] }
  0x20   :  { %212 = vst [vmem:[%s839_s2] sm:$0xff] %v204_v27  ;;  %v374_v35 = vand.u32 2147483647, %v373_v29  ;;  %v109_v26 = vmul.f32 %v257_v28, %v538_v17  ;;  %vm612_vm7 = vcmp.lt.f32.partialorder %v378_v7, 8388608.0  ;;  %v77_v40 = vmul.f32 1.2515645, %v61_v34 }
  0x21   :  { %v382_v39 = vand.u32 2147483647, %v381_v32  ;;  %v258_v42 = vand.u32 2147483647, %v76_v36  ;;  %v260_v43 = vcvt.f32.s32 %v76_v36  ;;  %v127_v44 = vmin.f32 %v45_v19, 1.614 }
  0x22   :  { %v376_v41 = vor.u32 %v375_v30, %v374_v35  ;;  %v263_v47 = vand.u32 2147483648, %v76_v36  ;;  %v266_v48 = vand.u32 2147483647, %v77_v40  ;;  %v268_v49 = vcvt.f32.s32 %v77_v40 }
  0x23   :  { %v384_v46 = vor.u32 %v383_v33, %v382_v39  ;;  %v261_v51 = vcvt.s32.f32 %v260_v43  ;;  %v271_v52 = vand.u32 2147483648, %v77_v40  ;;  %v142_v53 = vmul.f32 1.858736, %v126_v37 }
  0x24   :  { %v377_v50 = vsel %vm603_vm6, %v376_v41, %v140_v15  ;;  %vm621_vm8 = vcmp.lt.f32.partialorder %v258_v42, 8388608.0  ;;  %v269_v57 = vcvt.s32.f32 %v268_v49  ;;  %v143_v60 = vmul.f32 1.858736, %v127_v44 }
  0x25   :  { %v385_v54 = vsel %vm612_vm7, %v384_v46, %v141_v6  ;;  %v174_v55 = vmul.f32 %v377_v50, %v558_v45  ;;  %v262_v59 = vand.u32 2147483647, %v261_v51  ;;  %v386_v61 = vand.u32 2147483647, %v142_v53 }
  0x26   :  { %v175_v58 = vmul.f32 %v385_v54, %v558_v45  ;;  %vm626_vm9 = vcmp.lt.f32.partialorder %v266_v48, 8388608.0  ;;  %v270_v0 = vand.u32 2147483647, %v269_v57  ;;  %v388_v1 = vcvt.f32.s32 %v142_v53 }
  0x27   :  { %v190_v62 = vadd.f32 %v174_v55, %v108_v22  ;;  %v264_v4 = vor.u32 %v263_v47, %v262_v59  ;;  %v391_v8 = vand.u32 2147483648, %v142_v53  ;;  %v394_v9 = vand.u32 2147483647, %v143_v60 }
  0x28   :  { %v191_v3 = vadd.f32 %v175_v58, %v109_v26  ;;  %v272_v10 = vor.u32 %v271_v52, %v270_v0  ;;  %vm633_vm10 = vcmp.lt.f32.partialorder %v386_v61, 8388608.0  ;;  %v389_v12 = vcvt.s32.f32 %v388_v1 }
  0x29   :  { %v396_v13 = vcvt.f32.s32 %v143_v60  ;;  %v265_v16 = vsel %vm621_vm8, %v264_v4, %v76_v36  ;;  %v399_v6 = vand.u32 2147483648, %v143_v60  ;;  %v46_v19 = vmax.f32 %v30_v2, 0.0 }
  0x2a   :  { %v205_v15 = vpack.c.bf16 %v191_v3, %v190_v62  ;;  %v273_v21 = vsel %vm626_vm9, %v272_v10, %v77_v40  ;;  %v390_v23 = vand.u32 2147483647, %v389_v12  ;;  %vm649_vm11 = vcmp.lt.f32.partialorder %v394_v9, 8388608.0  ;;  %v34_v3 = vld [vmem:[%s838_s1 + $0x50] sm:$0xff] }
  0x2b   :  { %v397_v24 = vcvt.s32.f32 %v396_v13  ;;  %v47_v7 = vmax.f32 %v31_v14, 0.0  ;;  %v62_v25 = vmin.f32 %v46_v19, 0.799  ;;  %v128_v27 = vmin.f32 %v46_v19, 1.614 }
  0x2c   :  { %213 = vst [vmem:[%s839_s2 + $0x8] sm:$0xff] %v205_v15  ;;  %v110_v28 = vmul.f32 %v265_v16, %v538_v17  ;;  %v392_v29 = vor.u32 %v391_v8, %v390_v23  ;;  %v48_v31 = vmax.f32 %v645_v20, 0.0  ;;  %v111_v32 = vmul.f32 %v273_v21, %v538_v17 }
  0x2d   :  { %v398_v30 = vand.u32 2147483647, %v397_v24  ;;  %v63_v33 = vmin.f32 %v47_v7, 0.799  ;;  %v78_v34 = vmul.f32 1.2515645, %v62_v25 }
  0x2e   :  { %v129_v22 = vmin.f32 %v47_v7, 1.614  ;;  %v393_v35 = vsel %vm633_vm10, %v392_v29, %v142_v53  ;;  %v144_v37 = vmul.f32 1.858736, %v128_v27  ;;  %v49_v26 = vmax.f32 %v656_v5, 0.0 }
  0x2f   :  { %v400_v36 = vor.u32 %v399_v6, %v398_v30  ;;  %v176_v38 = vmul.f32 %v393_v35, %v558_v45  ;;  %v79_v39 = vmul.f32 1.2515645, %v63_v33  ;;  %v274_v40 = vand.u32 2147483647, %v78_v34 }
  0x30   :  { %v276_v41 = vcvt.f32.s32 %v78_v34  ;;  %v145_v43 = vmul.f32 1.858736, %v129_v22  ;;  %v402_v44 = vand.u32 2147483647, %v144_v37  ;;  %v64_v46 = vmin.f32 %v48_v31, 0.799 }
  0x31   :  { %v401_v42 = vsel %vm649_vm11, %v400_v36, %v143_v60  ;;  %v192_v48 = vadd.f32 %v176_v38, %v110_v28  ;;  %v279_v50 = vand.u32 2147483648, %v78_v34  ;;  %vm673_vm12 = vcmp.lt.f32.partialorder %v274_v40, 8388608.0 }
  0x32   :  { %v177_v47 = vmul.f32 %v401_v42, %v558_v45  ;;  %v277_v49 = vcvt.s32.f32 %v276_v41  ;;  %v282_v52 = vand.u32 2147483647, %v79_v39  ;;  %v284_v53 = vcvt.f32.s32 %v79_v39 }
  0x33   :  { %v287_v54 = vand.u32 2147483648, %v79_v39  ;;  %vm677_vm13 = vcmp.lt.f32.partialorder %v402_v44, 8388608.0  ;;  %v404_v58 = vcvt.f32.s32 %v144_v37  ;;  %v407_v60 = vand.u32 2147483648, %v144_v37 }
  0x34   :  { %v193_v55 = vadd.f32 %v177_v47, %v111_v32  ;;  %v278_v56 = vand.u32 2147483647, %v277_v49  ;;  %v285_v59 = vcvt.s32.f32 %v284_v53  ;;  %v410_v61 = vand.u32 2147483647, %v145_v43 }
  0x35   :  { %v412_v62 = vcvt.f32.s32 %v145_v43  ;;  %vm681_vm14 = vcmp.lt.f32.partialorder %v282_v52, 8388608.0  ;;  %v405_v2 = vcvt.s32.f32 %v404_v58  ;;  %v415_v9 = vand.u32 2147483648, %v145_v43 }
  0x36   :  { %v206_v63 = vpack.c.bf16 %v193_v55, %v192_v48  ;;  %v280_v0 = vor.u32 %v279_v50, %v278_v56  ;;  %v286_v4 = vand.u32 2147483647, %v285_v59  ;;  %v65_v10 = vmin.f32 %v49_v26, 0.799 }
  0x37   :  { %v413_v8 = vcvt.s32.f32 %v412_v62  ;;  %v406_v12 = vand.u32 2147483647, %v405_v2  ;;  %vm695_vm15 = vcmp.lt.f32.partialorder %v410_v61, 8388608.0  ;;  %v80_v14 = vmul.f32 1.2515645, %v64_v46 }
  0x38   :  { %214 = vst [vmem:[%s839_s2 + $0x10] sm:$0xff] %v206_v63  ;;  %v281_v11 = vsel %vm673_vm12, %v280_v0, %v78_v34  ;;  %v288_v15 = vor.u32 %v287_v54, %v286_v4  ;;  %v81_v6 = vmul.f32 1.2515645, %v65_v10  ;;  %v50_v19 = vmax.f32 %v34_v3, 0.0  ;;  %v35_v34 = vld [vmem:[%s838_s1 + $0x58] sm:$0xff] }
  0x39   :  { %v414_v16 = vand.u32 2147483647, %v413_v8  ;;  %v112_v21 = vmul.f32 %v281_v11, %v538_v17  ;;  %v408_v23 = vor.u32 %v407_v60, %v406_v12  ;;  %v290_v18 = vand.u32 2147483647, %v80_v14 }
  0x3a   :  { %v292_v24 = vcvt.f32.s32 %v80_v14  ;;  %v289_v7 = vsel %vm681_vm14, %v288_v15, %v79_v39  ;;  %v295_v27 = vand.u32 2147483648, %v80_v14  ;;  %v300_v28 = vcvt.f32.s32 %v81_v6 }
  0x3b   :  { %v416_v25 = vor.u32 %v415_v9, %v414_v16  ;;  %v113_v29 = vmul.f32 %v289_v7, %v538_v17  ;;  %v409_v30 = vsel %vm677_vm13, %v408_v23, %v144_v37  ;;  %v298_v33 = vand.u32 2147483647, %v81_v6 }
  0x3c   :  { %v293_v32 = vcvt.s32.f32 %v292_v24  ;;  %v178_v35 = vmul.f32 %v409_v30, %v558_v45  ;;  %vm711_vm0 = vcmp.lt.f32.partialorder %v290_v18, 8388608.0  ;;  %v301_v38 = vcvt.s32.f32 %v300_v28 }
  0x3d   :  { %v417_v22 = vsel %vm695_vm15, %v416_v25, %v145_v43  ;;  %v303_v37 = vand.u32 2147483648, %v81_v6  ;;  %v130_v41 = vmin.f32 %v48_v31, 1.614  ;;  %v131_v46 = vmin.f32 %v49_v26, 1.614 }
  0x3e   :  { %v179_v39 = vmul.f32 %v417_v22, %v558_v45  ;;  %v294_v40 = vand.u32 2147483647, %v293_v32  ;;  %v194_v42 = vadd.f32 %v178_v35, %v112_v21  ;;  %v302_v44 = vand.u32 2147483647, %v301_v38  ;;  %v36_v35 = vld [vmem:[%s838_s1 + $0x60] sm:$0xff] }
  0x3f   :  { %v51_v43 = vmax.f32 %v35_v34, 0.0  ;;  %vm720_vm1 = vcmp.lt.f32.partialorder %v298_v33, 8388608.0  ;;  %v146_v50 = vmul.f32 1.858736, %v130_v41  ;;  %v147_v52 = vmul.f32 1.858736, %v131_v46 }
  0x40   :  { %v195_v47 = vadd.f32 %v179_v39, %v113_v29  ;;  %v296_v48 = vor.u32 %v295_v27, %v294_v40  ;;  %v304_v51 = vor.u32 %v303_v37, %v302_v44  ;;  %v66_v53 = vmin.f32 %v50_v19, 0.799  ;;  %v37_v37 = vld [vmem:[%s838_s1 + $0x68] sm:$0xff] }
  0x41   :  { %v67_v54 = vmin.f32 %v51_v43, 0.799  ;;  %v418_v31 = vand.u32 2147483647, %v146_v50  ;;  %v420_v56 = vcvt.f32.s32 %v146_v50  ;;  %v426_v26 = vand.u32 2147483647, %v147_v52 }
  0x42   :  { %v207_v55 = vpack.c.bf16 %v195_v47, %v194_v42  ;;  %v297_v20 = vsel %vm711_vm0, %v296_v48, %v80_v14  ;;  %v305_v5 = vsel %vm720_vm1, %v304_v51, %v81_v6  ;;  %v132_v57 = vmin.f32 %v50_v19, 1.614 }
  0x43   :  { %v114_v58 = vmul.f32 %v297_v20, %v538_v17  ;;  %v421_v59 = vcvt.s32.f32 %v420_v56  ;;  %v423_v60 = vand.u32 2147483648, %v146_v50  ;;  %v428_v61 = vcvt.f32.s32 %v147_v52 }
  0x44   :  { %215 = vst [vmem:[%s839_s2 + $0x18] sm:$0xff] %v207_v55  ;;  %v115_v62 = vmul.f32 %v305_v5, %v538_v17  ;;  %vm733_vm2 = vcmp.lt.f32.partialorder %v418_v31, 8388608.0  ;;  %v82_v0 = vmul.f32 1.2515645, %v66_v53  ;;  %v737_v1 = vmul.f32 1.2515645, %v67_v54 }
  0x45   :  { %v422_v2 = vand.u32 2147483647, %v421_v59  ;;  %v429_v3 = vcvt.s32.f32 %v428_v61  ;;  %v431_v4 = vand.u32 2147483648, %v147_v52  ;;  %v133_v8 = vmin.f32 %v51_v43, 1.614  ;;  %v38_v31 = vld [vmem:[%s838_s1 + $0x70] sm:$0xff] }
  0x46   :  { %vm739_vm3 = vcmp.lt.f32.partialorder %v426_v26, 8388608.0  ;;  %v306_v10 = vand.u32 2147483647, %v82_v0  ;;  %v308_v11 = vcvt.f32.s32 %v82_v0  ;;  %v148_v12 = vmul.f32 1.858736, %v132_v57 }
  0x47   :  { %v424_v13 = vor.u32 %v423_v60, %v422_v2  ;;  %v430_v14 = vand.u32 2147483647, %v429_v3  ;;  %v311_v15 = vand.u32 2147483648, %v82_v0  ;;  %v316_v16 = vcvt.f32.s32 %v737_v1 }
  0x48   :  { %vm744_vm4 = vcmp.lt.f32.partialorder %v306_v10, 8388608.0  ;;  %v309_v19 = vcvt.s32.f32 %v308_v11  ;;  %v314_v21 = vand.u32 2147483647, %v737_v1  ;;  %v319_v23 = vand.u32 2147483648, %v737_v1 }
  0x49   :  { %v425_v18 = vsel %vm733_vm2, %v424_v13, %v146_v50  ;;  %v432_v24 = vor.u32 %v431_v4, %v430_v14  ;;  %v317_v7 = vcvt.s32.f32 %v316_v16  ;;  %v149_v25 = vmul.f32 1.858736, %v133_v8 }
  0x4a   :  { %v180_v27 = vmul.f32 %v425_v18, %v558_v45  ;;  %v310_v28 = vand.u32 2147483647, %v309_v19  ;;  %v434_v29 = vand.u32 2147483647, %v148_v12  ;;  %v436_v30 = vcvt.f32.s32 %v148_v12 }
  0x4b   :  { %v433_v32 = vsel %vm739_vm3, %v432_v24, %v147_v52  ;;  %v318_v33 = vand.u32 2147483647, %v317_v7  ;;  %v439_v34 = vand.u32 2147483648, %v148_v12  ;;  %v442_v22 = vand.u32 2147483647, %v149_v25 }
  0x4c   :  { %v181_v36 = vmul.f32 %v433_v32, %v558_v45  ;;  %v196_v38 = vadd.f32 %v180_v27, %v114_v58  ;;  %v312_v39 = vor.u32 %v311_v15, %v310_v28  ;;  %v437_v40 = vcvt.s32.f32 %v436_v30 }
  0x4d   :  { %vm762_vm5 = vcmp.lt.f32.partialorder %v314_v21, 8388608.0  ;;  %v320_v42 = vor.u32 %v319_v23, %v318_v33  ;;  %v444_v44 = vcvt.f32.s32 %v149_v25  ;;  %vm766_vm6 = vcmp.lt.f32.partialorder %v434_v29, 8388608.0 }
  0x4e   :  { %v197_v46 = vadd.f32 %v181_v36, %v115_v62  ;;  %v438_v47 = vand.u32 2147483647, %v437_v40  ;;  %v52_v48 = vmax.f32 %v36_v35, 0.0  ;;  %v313_v49 = vsel %vm744_vm4, %v312_v39, %v82_v0 }
  0x4f   :  { %v445_v50 = vcvt.s32.f32 %v444_v44  ;;  %v447_v51 = vand.u32 2147483648, %v149_v25  ;;  %v53_v52 = vmax.f32 %v37_v37, 0.0  ;;  %vm772_vm7 = vcmp.lt.f32.partialorder %v442_v22, 8388608.0 }
  0x50   :  { %v208_v53 = vpack.c.bf16 %v197_v46, %v196_v38  ;;  %v440_v54 = vor.u32 %v439_v34, %v438_v47  ;;  %v68_v20 = vmin.f32 %v52_v48, 0.799  ;;  %v321_v56 = vsel %vm762_vm5, %v320_v42, %v737_v1 }
  0x51   :  { %v446_v5 = vand.u32 2147483647, %v445_v50  ;;  %v69_v26 = vmin.f32 %v53_v52, 0.799  ;;  %v134_v57 = vmin.f32 %v52_v48, 1.614  ;;  %v116_v58 = vmul.f32 %v313_v49, %v538_v17 }
  0x52   :  { %216 = vst [vmem:[%s839_s2 + $0x20] sm:$0xff] %v208_v53  ;;  %v441_v59 = vsel %vm766_vm6, %v440_v54, %v148_v12  ;;  %v84_v60 = vmul.f32 1.2515645, %v68_v20  ;;  %v135_v61 = vmin.f32 %v53_v52, 1.614  ;;  %v117_v1 = vmul.f32 %v321_v56, %v538_v17 }
  0x53   :  { %v448_v62 = vor.u32 %v447_v51, %v446_v5  ;;  %v182_v63 = vmul.f32 %v441_v59, %v558_v45  ;;  %v85_v0 = vmul.f32 1.2515645, %v69_v26  ;;  %v150_v2 = vmul.f32 1.858736, %v134_v57 }
  0x54   :  { %v322_v3 = vand.u32 2147483647, %v84_v60  ;;  %v324_v4 = vcvt.f32.s32 %v84_v60  ;;  %v54_v8 = vmax.f32 %v38_v31, 0.0  ;;  %v327_v10 = vand.u32 2147483648, %v84_v60 }
  0x55   :  { %v449_v9 = vsel %vm772_vm7, %v448_v62, %v149_v25  ;;  %v332_v11 = vcvt.f32.s32 %v85_v0  ;;  %v151_v13 = vmul.f32 1.858736, %v135_v61  ;;  %v198_v14 = vadd.f32 %v182_v63, %v116_v58  ;;  %v39_v25 = vld [vmem:[%s838_s1 + $0x78] sm:$0xff] }
  0x56   :  { %v183_v12 = vmul.f32 %v449_v9, %v558_v45  ;;  %v325_v15 = vcvt.s32.f32 %v324_v4  ;;  %v330_v16 = vand.u32 2147483647, %v85_v0  ;;  %vm793_vm8 = vcmp.lt.f32.partialorder %v322_v3, 8388608.0 }
  0x57   :  { %v333_v19 = vcvt.s32.f32 %v332_v11  ;;  %v335_v21 = vand.u32 2147483648, %v85_v0  ;;  %v452_v23 = vcvt.f32.s32 %v150_v2  ;;  %v450_v7 = vand.u32 2147483647, %v150_v2 }
  0x58   :  { %v199_v18 = vadd.f32 %v183_v12, %v117_v1  ;;  %v326_v24 = vand.u32 2147483647, %v325_v15  ;;  %v455_v27 = vand.u32 2147483648, %v150_v2  ;;  %v458_v30 = vand.u32 2147483647, %v151_v13 }
  0x59   :  { %v334_v28 = vand.u32 2147483647, %v333_v19  ;;  %v453_v29 = vcvt.s32.f32 %v452_v23  ;;  %v460_v32 = vcvt.f32.s32 %v151_v13  ;;  %vm800_vm9 = vcmp.lt.f32.partialorder %v330_v16, 8388608.0 }
  0x5a   :  { %v209_v33 = vpack.c.bf16 %v199_v18, %v198_v14  ;;  %v328_v34 = vor.u32 %v327_v10, %v326_v24  ;;  %v463_v35 = vand.u32 2147483648, %v151_v13  ;;  %v55_v40 = vmax.f32 %v39_v25, 0.0 }
  0x5b   :  { %v336_v36 = vor.u32 %v335_v21, %v334_v28  ;;  %v454_v38 = vand.u32 2147483647, %v453_v29  ;;  %v461_v39 = vcvt.s32.f32 %v460_v32  ;;  %vm451_vm10 = vcmp.lt.f32.partialorder %v450_v7, 8388608.0 }
  0x5c   :  { %217 = vst [vmem:[%s839_s2 + $0x28] sm:$0xff] %v209_v33  ;;  %v329_v37 = vsel %vm793_vm8, %v328_v34, %v84_v60  ;;  %v70_v41 = vmin.f32 %v54_v8, 0.799  ;;  %v136_v42 = vmin.f32 %v54_v8, 1.614  ;;  %vm811_vm11 = vcmp.lt.f32.partialorder %v458_v30, 8388608.0 }
  0x5d   :  { %v337_v44 = vsel %vm800_vm9, %v336_v36, %v85_v0  ;;  %v456_v46 = vor.u32 %v455_v27, %v454_v38  ;;  %v462_v47 = vand.u32 2147483647, %v461_v39  ;;  %v118_v48 = vmul.f32 %v329_v37, %v538_v17 }
  0x5e   :  { %v71_v49 = vmin.f32 %v55_v40, 0.799  ;;  %v86_v50 = vmul.f32 1.2515645, %v70_v41  ;;  %v137_v51 = vmin.f32 %v55_v40, 1.614  ;;  %v119_v52 = vmul.f32 %v337_v44, %v538_v17 }
  0x5f   :  { %v457_v53 = vsel %vm451_vm10, %v456_v46, %v150_v2  ;;  %v464_v54 = vor.u32 %v463_v35, %v462_v47  ;;  %v152_v55 = vmul.f32 1.858736, %v136_v42 }
  0x60   :  { %v184_v20 = vmul.f32 %v457_v53, %v558_v45  ;;  %v87_v31 = vmul.f32 1.2515645, %v71_v49  ;;  %v338_v56 = vand.u32 2147483647, %v86_v50  ;;  %v340_v5 = vcvt.f32.s32 %v86_v50 }
  0x61   :  { %v465_v26 = vsel %vm811_vm11, %v464_v54, %v151_v13  ;;  %v153_v57 = vmul.f32 1.858736, %v137_v51  ;;  %v343_v61 = vand.u32 2147483648, %v86_v50  ;;  %v466_v0 = vand.u32 2147483647, %v152_v55 }
  0x62   :  { %v185_v58 = vmul.f32 %v465_v26, %v558_v45  ;;  %v200_v59 = vadd.f32 %v184_v20, %v118_v48  ;;  %v341_v60 = vcvt.s32.f32 %v340_v5  ;;  %vm821_vm12 = vcmp.lt.f32.partialorder %v338_v56, 8388608.0 }
  0x63   :  { %v348_v63 = vcvt.f32.s32 %v87_v31  ;;  %v346_v3 = vand.u32 2147483647, %v87_v31  ;;  %v468_v4 = vcvt.f32.s32 %v152_v55  ;;  %v351_v9 = vand.u32 2147483648, %v87_v31 }
  0x64   :  { %v201_v2 = vadd.f32 %v185_v58, %v119_v52  ;;  %v342_v1 = vand.u32 2147483647, %v341_v60  ;;  %v471_v10 = vand.u32 2147483648, %v152_v55  ;;  %v476_v11 = vcvt.f32.s32 %v153_v57 }
  0x65   :  { %v349_v8 = vcvt.s32.f32 %v348_v63  ;;  %v469_v14 = vcvt.s32.f32 %v468_v4  ;;  %v474_v15 = vand.u32 2147483647, %v153_v57  ;;  %v479_v19 = vand.u32 2147483648, %v153_v57 }
  0x66   :  { %v210_v13 = vpack.c.bf16 %v201_v2, %v200_v59  ;;  %v344_v12 = vor.u32 %v343_v61, %v342_v1  ;;  %v477_v6 = vcvt.s32.f32 %v476_v11  ;;  %vm347_vm13 = vcmp.lt.f32.partialorder %v346_v3, 8388608.0 }
  0x67   :  { %v350_v16 = vand.u32 2147483647, %v349_v8  ;;  %v470_v23 = vand.u32 2147483647, %v469_v14  ;;  %vm467_vm14 = vcmp.lt.f32.partialorder %v466_v0, 8388608.0  ;;  %vm475_vm15 = vcmp.lt.f32.partialorder %v474_v15, 8388608.0 }
  0x68   :  { %218 = vst [vmem:[%s839_s2 + $0x30] sm:$0xff] %v210_v13  ;;  %v345_v21 = vsel %vm821_vm12, %v344_v12, %v86_v50  ;;  %v478_v24 = vand.u32 2147483647, %v477_v6 }
  0x69   :  { %v352_v18 = vor.u32 %v351_v9, %v350_v16  ;;  %v472_v7 = vor.u32 %v471_v10, %v470_v23  ;;  %v120_v25 = vmul.f32 %v345_v21, %v538_v17 }
  0x6a   :  { %v480_v28 = vor.u32 %v479_v19, %v478_v24 }
  0x6b   :  { %v353_v27 = vsel %vm347_vm13, %v352_v18, %v87_v31  ;;  %v473_v30 = vsel %vm467_vm14, %v472_v7, %v152_v55 }
  0x6c   :  { %v121_v29 = vmul.f32 %v353_v27, %v538_v17  ;;  %v481_v32 = vsel %vm475_vm15, %v480_v28, %v153_v57  ;;  %v186_v33 = vmul.f32 %v473_v30, %v558_v45 }
  0x6d   :  { %v187_v34 = vmul.f32 %v481_v32, %v558_v45 }
  0x6e   :  { %v202_v22 = vadd.f32 %v186_v33, %v120_v25 }
  0x6f   :  { %v203_v35 = vadd.f32 %v187_v34, %v121_v29 }
  0x71   :  { %v211_v36 = vpack.c.bf16 %v203_v35, %v202_v22 }
  0x73   :  { %219 = vst [vmem:[%s839_s2 + $0x38] sm:$0xff] %v211_v36 }
  0x74   :  { %224 = vsyncpa [#allocation3], 1 }

// kernel: mix_activ_conv2d.3
= control target key start
LH: loop header
LB: loop body
LE: loop exit
PB: predicated region body
PF: predicated region fallthrough
CT: control target
= control target key end

     0   :  { %8 = vsyncpa [#allocation4], 0  ;;  %s1207_s12 = smov 0   ;;  %s1209_s13 = smov 0   ;;  %s1425_s0 = inlined_call_operand.vmem [shape: f32[4], index: 0, kind: input, shape index: {}]   ;;  %s1426_s1 = inlined_call_operand.vmem [shape: bf16[512,36], index: 1, kind: input, shape index: {}]   ;;  %s1427_s2 = inlined_call_operand.vmem [shape: f32[2,36,128], index: 2, kind: input, shape index: {}]   ;;  %s1428_s3 = inlined_call_operand.vmem [shape: f32[512,128], index: 3, kind: output, shape index: {}]  }
   0x1   :  { %s1211_s14 = smov 0  }
   0x2 LB: > { %s901_s15 = sadd.s32 4294967295, %s1184_s14   ;;  %s33_s16 = sadd.s32 1, %s1180_s13  ;;  %s1184_s14 = sphi %s1211_s14, %s14_s14   ;;  %s1180_s13 = sphi %s1209_s13, %s1444_s13   ;;  %s1176_s12 = sphi %s1207_s12, %s1443_s12  }
   0x3   : > { %p35_p0 = scmp.ge.s32.totalorder %s33_s16, 2  ;;  %p903_p1 = scmp.ge.s32.totalorder %s1184_s14, 1 }
   0x4   : > { %p143_p2 = scmp.lt.s32.totalorder %s1184_s14, 3  ;;  %p1116_p4 = scmp.eq.s32.totalorder %s901_s15, 0 }
   0x5   : > { %s1446_s16 = smov (%p35_p0, %s33_s16), 0  ;;  %s155_s19 = sshll.u32 %s1425_s0, 4  ;;  %s156_s19 = int_to_ptr.vmem [resolvable:$true] %s155_s19 }
   0x6   : > { %p144_p3 = pnand %p903_p1, %p143_p2  ;;  %s1186_s20 = smov [#allocation3]  }
   0x8   : > { %p1112_p5 = pneg %p144_p3  ;;  %192 = sbr.rel (%p144_p3) target bundleno = 261 (0x105), region = 32 }
   0xa   : > { %p1113_p6 = pnand %p1116_p4, %p1112_p5 }
   0xc   : > { %1115 = dma.vmem_to_smem (!%p1113_p6), %s156_s19, 16, %s1186_s20, [#allocation4]  }
   0xd   : > { %1171 = dma.done.wait (%p1116_p4), [#allocation4], 16  }
   0xe   : > { %1173 = vsyncadd (%p1116_p4), [#allocation4], 4294967280 }
   0xf   : > { %199 = sfence }
  0x10   : > { %s296_s21 = sld [smem:[#allocation3]]  ;;  %v302_v0 = vld [vmem:[%s1427_s2 + $0x20] sm:$0xf]  ;;  %v300_v1 = vld [vmem:[%s1427_s2 + $0x10] sm:$0xff]  ;;  %v301_v2 = vld [vmem:[%s1427_s2 + $0x18] sm:$0xff]  ;;  %vm566_vm5 = vcmask 1041408  }
  0x11   : > { %s913_s22 = sld [smem:[#allocation3 + $0x2]]  ;;  %v920_v4 = vld [vmem:[%s1427_s2 + $0x48] sm:$0xf]  ;;  %v298_v5 = vld [vmem:[%s1427_s2] sm:$0xff]  ;;  %v918_v24 = vld [vmem:[%s1427_s2 + $0x38] sm:$0xff]  ;;  %vm517_vm11 = vcmask 293888  }
  0x12   : > { %s914_s23 = sld [smem:[#allocation3 + $0x1]]  ;;  %v299_v8 = vld [vmem:[%s1427_s2 + $0x8] sm:$0xff]  ;;  %v919_v33 = vld [vmem:[%s1427_s2 + $0x40] sm:$0xff] }
  0x13   : > { %s915_s24 = sld [smem:[#allocation3 + $0x3]] }
  0x16   : > { %v303_v3 = vstv %s296_s21 }
  0x17   : > { %v308_v6 = vmul.f32 %v303_v3, %v302_v0  ;;  %v306_v7 = vmul.f32 %v303_v3, %v300_v1  ;;  %v1249_v9 = vstv %s913_s22  ;;  %v307_v11 = vmul.f32 %v303_v3, %v301_v2  ;;  %s909_s22 = sshll.u32 %s1176_s12, 5 }
  0x18   : > { %v1251_v10 = vstv %s914_s23  ;;  %v1254_v15 = vmul.f32 %v303_v3, %v298_v5  ;;  %v1256_v19 = vmul.f32 %v303_v3, %v299_v8  ;;  %p233_p7 = scmp.lt.s32.totalorder %s909_s22, 63 }
  0x19   : > { %v1060_v12 = vand.u32 2147483647, %v308_v6  ;;  %v1062_v13 = vcvt.f32.s32 %v308_v6  ;;  %v343_v14 = vmul.f32 %v920_v4, %v1251_v10  ;;  %v1065_v16 = vand.u32 2147483648, %v308_v6 }
  0x1a   : > { %v1044_v17 = vand.u32 2147483647, %v306_v7  ;;  %v1046_v18 = vcvt.f32.s32 %v306_v7  ;;  %v1258_v23 = vstv %s915_s24  ;;  %v1049_v27 = vand.u32 2147483648, %v306_v7  ;;  %s1448_s22 = smov (!%p233_p7, %s909_s22), 63 }
  0x1b   : > { %v1063_v20 = vcvt.s32.f32 %v1062_v13  ;;  %v1100_v21 = vand.u32 2147483647, %v343_v14  ;;  %v1102_v22 = vcvt.f32.s32 %v343_v14  ;;  %vm1263_vm0 = vcmp.lt.f32.partialorder %v1060_v12, 8388608.0  ;;  %s910_s12 = sshll.u32 %s1448_s22, 2  ;;  %s912_s26 = sshll.u32 %s1448_s22, 3 }
  0x1c   : > { %v1047_v26 = vcvt.s32.f32 %v1046_v18  ;;  %v1052_v28 = vand.u32 2147483647, %v307_v11  ;;  %v1105_v31 = vand.u32 2147483648, %v343_v14  ;;  %v1054_v32 = vcvt.f32.s32 %v307_v11  ;;  %s1344_s25 = scalar_lea.vmem %s1426_s1, %s910_s12  ;;  %s1382_s29 = scalar_lea.vmem %s1428_s3, %s912_s26 }
  0x1d   : > { %v1064_v29 = vand.u32 2147483647, %v1063_v20  ;;  %v1103_v30 = vcvt.s32.f32 %v1102_v22  ;;  %vm1270_vm1 = vcmp.lt.f32.partialorder %v1100_v21, 8388608.0  ;;  %vm1274_vm2 = vcmp.lt.f32.partialorder %v1044_v17, 8388608.0  ;;  %v916_v20 = vld [vmem:[%s1427_s2 + $0x28] sm:$0xff] }
  0x1e   : > { %v1048_v36 = vand.u32 2147483647, %v1047_v26  ;;  %v341_v37 = vmul.f32 %v918_v24, %v1251_v10  ;;  %v1055_v40 = vcvt.s32.f32 %v1054_v32  ;;  %v1057_v41 = vand.u32 2147483648, %v307_v11  ;;  %v917_v26 = vld [vmem:[%s1427_s2 + $0x30] sm:$0xff]  ;;  %v1016_v24 = vld [vmem:[%s1344_s25 + $0x68] sm:$0xff] }
  0x1f   : > { %v1066_v38 = vor.u32 %v1065_v16, %v1064_v29  ;;  %v1104_v39 = vand.u32 2147483647, %v1103_v30  ;;  %vm1279_vm3 = vcmp.lt.f32.partialorder %v1052_v28, 8388608.0  ;;  %v342_v44 = vmul.f32 %v919_v33, %v1251_v10 }
  0x20   : > { %v1050_v42 = vor.u32 %v1049_v27, %v1048_v36  ;;  %v1086_v45 = vcvt.f32.s32 %v341_v37  ;;  %v1056_v48 = vand.u32 2147483647, %v1055_v40  ;;  %v1084_v49 = vand.u32 2147483647, %v341_v37 }
  0x21   : > { %v1067_v46 = vsel %vm1263_vm0, %v1066_v38, %v308_v6  ;;  %v1106_v47 = vor.u32 %v1105_v31, %v1104_v39  ;;  %v1089_v53 = vand.u32 2147483648, %v341_v37  ;;  %v1092_v57 = vand.u32 2147483647, %v342_v44 }
  0x22   : > { %v318_v50 = vmax.f32 %v1067_v46, -1.0  ;;  %v1051_v51 = vsel %vm1274_vm2, %v1050_v42, %v306_v7  ;;  %v1087_v52 = vcvt.s32.f32 %v1086_v45  ;;  %v1058_v55 = vor.u32 %v1057_v41, %v1056_v48 }
  0x23   : > { %v1107_v54 = vsel %vm1270_vm1, %v1106_v47, %v343_v14  ;;  %v316_v56 = vmax.f32 %v1051_v51, -1.0  ;;  %v1094_v61 = vcvt.f32.s32 %v342_v44  ;;  %vm1085_vm4 = vcmp.lt.f32.partialorder %v1084_v49, 8388608.0 }
  0x24   : > { %v323_v58 = vmin.f32 %v318_v50, 0.0  ;;  %v353_v59 = vmax.f32 %v1107_v54, -2.0  ;;  %v1088_v60 = vand.u32 2147483647, %v1087_v52  ;;  %v1059_v62 = vsel %vm1279_vm3, %v1058_v55, %v307_v11 }
  0x25   : > { %v321_v63 = vmin.f32 %v316_v56, 0.0  ;;  %v1028_v0 = vand.u32 2147483647, %v1254_v15  ;;  %v317_v3 = vmax.f32 %v1059_v62, -1.0  ;;  %v1095_v5 = vcvt.s32.f32 %v1094_v61 }
  0x26   : > { %v329_v1 = vmul.f32 %v1249_v9, %v323_v58  ;;  %v358_v2 = vmin.f32 %v353_v59, 1.0  ;;  %v1090_v4 = vor.u32 %v1089_v53, %v1088_v60  ;;  %v1097_v6 = vand.u32 2147483648, %v342_v44 }
  0x27   : > { %v1030_v7 = vcvt.f32.s32 %v1254_v15  ;;  %v327_v12 = vmul.f32 %v1249_v9, %v321_v63  ;;  %vm1297_vm6 = vcmp.lt.f32.partialorder %v1092_v57, 8388608.0  ;;  %v1096_v14 = vand.u32 2147483647, %v1095_v5 }
  0x28   : > { %v364_v8 = vmul.f32 %v1258_v23, %v358_v2  ;;  %v1091_v13 = vsel %vm1085_vm4, %v1090_v4, %v341_v37  ;;  %v1033_v18 = vand.u32 2147483648, %v1254_v15  ;;  %v322_v22 = vmin.f32 %v317_v3, 0.0 }
  0x29   : > { %v351_v16 = vmax.f32 %v1091_v13, -2.0  ;;  %v1031_v17 = vcvt.s32.f32 %v1030_v7  ;;  %vm1305_vm7 = vcmp.lt.f32.partialorder %v1028_v0, 8388608.0  ;;  %v1038_v25 = vcvt.f32.s32 %v1256_v19 }
  0x2a   : > { %v369_v21 = vadd.f32 %v364_v8, %v329_v1  ;;  %v1098_v27 = vor.u32 %v1097_v6, %v1096_v14  ;;  %v1036_v30 = vand.u32 2147483647, %v1256_v19  ;;  %v1041_v33 = vand.u32 2147483648, %v1256_v19 }
  0x2b   : > { %v356_v28 = vmin.f32 %v351_v16, 1.0  ;;  %v1032_v29 = vand.u32 2147483647, %v1031_v17  ;;  %v1039_v32 = vcvt.s32.f32 %v1038_v25  ;;  %v339_v34 = vmul.f32 %v916_v20, %v1251_v10  ;;  %v1003_v16 = vld [vmem:[%s1344_s25] sm:$0xff]  ;;  %v1004_v20 = vld [vmem:[%s1344_s25 + $0x8] sm:$0xff]  ;;  %v1005_v25 = vld [vmem:[%s1344_s25 + $0x10] sm:$0xff] }
  0x2c   : > { %v436_v31 = vpack.c.bf16 %v369_v21, %v369_v21  ;;  %v1099_v35 = vsel %vm1297_vm6, %v1098_v27, %v342_v44  ;;  %v340_v38 = vmul.f32 %v917_v26, %v1251_v10  ;;  %vm1324_vm8 = vcmp.lt.f32.partialorder %v1036_v30, 8388608.0  ;;  %v1007_v17 = vld [vmem:[%s1344_s25 + $0x20] sm:$0xff]  ;;  %v1008_v21 = vld [vmem:[%s1344_s25 + $0x28] sm:$0xff]  ;;  %v1009_v26 = vld [vmem:[%s1344_s25 + $0x30] sm:$0xff] }
  0x2d   : > { %v362_v36 = vmul.f32 %v1258_v23, %v356_v28  ;;  %v1034_v37 = vor.u32 %v1033_v18, %v1032_v29  ;;  %v352_v40 = vmax.f32 %v1099_v35, -2.0  ;;  %v1040_v41 = vand.u32 2147483647, %v1039_v32  ;;  %v1015_v18 = vld [vmem:[%s1344_s25 + $0x60] sm:$0xff]  ;;  %v1013_v27 = vld [vmem:[%s1344_s25 + $0x50] sm:$0xff]  ;;  %v1006_v29 = vld [vmem:[%s1344_s25 + $0x18] sm:$0xff] }
  0x2e   : > { %v568_v39 = vsel %vm566_vm5, %v436_v31, 0  ;;  %v1070_v44 = vcvt.f32.s32 %v339_v34  ;;  %v328_v10 = vmul.f32 %v1249_v9, %v322_v22  ;;  %v1068_v47 = vand.u32 2147483647, %v339_v34  ;;  %v1012_v22 = vld [vmem:[%s1344_s25 + $0x48] sm:$0xff]  ;;  %v1017_v28 = vld [vmem:[%s1344_s25 + $0x70] sm:$0xff]  ;;  %v1010_v30 = vld [vmem:[%s1344_s25 + $0x38] sm:$0xff] }
  0x2f   : > { %575 = vmatpush.bf16.msra.mxu0 %v568_v39  ;;  %1019 = vmatpush.bf16.msra.mxu1 %v568_v39  ;;  %v1035_v42 = vsel %vm1305_vm7, %v1034_v37, %v1254_v15  ;;  %v357_v45 = vmin.f32 %v352_v40, 1.0  ;;  %v1042_v46 = vor.u32 %v1041_v33, %v1040_v41  ;;  %v367_v48 = vadd.f32 %v362_v36, %v327_v12  ;;  %v1014_v31 = vld [vmem:[%s1344_s25 + $0x58] sm:$0xff] }
  0x30   : > { %1020 = vmatpush.bf16.msra.mxu2 %v568_v39  ;;  %1021 = vmatpush.bf16.msra.mxu3 %v568_v39  ;;  %v1071_v49 = vcvt.s32.f32 %v1070_v44  ;;  %v1073_v50 = vand.u32 2147483648, %v339_v34  ;;  %v1078_v51 = vcvt.f32.s32 %v340_v38  ;;  %v314_v53 = vmax.f32 %v1035_v42, -1.0  ;;  %v1018_v32 = vld [vmem:[%s1344_s25 + $0x78] sm:$0xff] }
  0x31   : > { %v363_v52 = vmul.f32 %v1258_v23, %v357_v45  ;;  %v1043_v15 = vsel %vm1324_vm8, %v1042_v46, %v1256_v19  ;;  %v1076_v54 = vand.u32 2147483647, %v340_v38  ;;  %v1081_v57 = vand.u32 2147483648, %v340_v38 }
  0x32   : > { %v1072_v55 = vand.u32 2147483647, %v1071_v49  ;;  %v1079_v56 = vcvt.s32.f32 %v1078_v51  ;;  %v315_v59 = vmax.f32 %v1043_v15, -1.0  ;;  %vm1069_vm9 = vcmp.lt.f32.partialorder %v1068_v47, 8388608.0 }
  0x33   : > { %v368_v58 = vadd.f32 %v363_v52, %v328_v10  ;;  %v319_v63 = vmin.f32 %v314_v53, 0.0  ;;  %vm1077_vm10 = vcmp.lt.f32.partialorder %v1076_v54, 8388608.0 }
  0x34   : > { %v1074_v60 = vor.u32 %v1073_v50, %v1072_v55  ;;  %v1080_v61 = vand.u32 2147483647, %v1079_v56  ;;  %v320_v19 = vmin.f32 %v315_v59, 0.0 }
  0x35   : > { %v435_v62 = vpack.c.bf16 %v368_v58, %v367_v48  ;;  %v325_v4 = vmul.f32 %v1249_v9, %v319_v63 }
  0x36   : > { %v1075_v0 = vsel %vm1069_vm9, %v1074_v60, %v339_v34  ;;  %v1082_v1 = vor.u32 %v1081_v57, %v1080_v61  ;;  %v326_v7 = vmul.f32 %v1249_v9, %v320_v19 }
  0x37   : > { %576 = vmatpush.bf16.msra.mxu0 %v435_v62  ;;  %1022 = vmatpush.bf16.msra.mxu1 %v435_v62  ;;  %v349_v2 = vmax.f32 %v1075_v0, -2.0 }
  0x38   : > { %1023 = vmatpush.bf16.msra.mxu2 %v435_v62  ;;  %1024 = vmatpush.bf16.msra.mxu3 %v435_v62  ;;  %v1083_v3 = vsel %vm1077_vm10, %v1082_v1, %v340_v38 }
  0x39   : > { %v350_v5 = vmax.f32 %v1083_v3, -2.0  ;;  %v354_v6 = vmin.f32 %v349_v2, 1.0 }
  0x3b   : > { %v355_v8 = vmin.f32 %v350_v5, 1.0  ;;  %v360_v12 = vmul.f32 %v1258_v23, %v354_v6 }
  0x3d   : > { %v361_v13 = vmul.f32 %v1258_v23, %v355_v8  ;;  %v365_v11 = vadd.f32 %v360_v12, %v325_v4  ;;  %v1011_v23 = vld [vmem:[%s1344_s25 + $0x40] sm:$0xff] }
  0x3f   : > { %v366_v14 = vadd.f32 %v361_v13, %v326_v7 }
  0x41   : > { %v434_v9 = vpack.c.bf16 %v366_v14, %v365_v11 }
  0x43   : > { %577 = vmatpush.bf16.msra.mxu0 %v434_v9  ;;  %1025 = vmatpush.bf16.msra.mxu1 %v434_v9 }
  0x44   : > { %1026 = vmatpush.bf16.msra.mxu2 %v434_v9  ;;  %1027 = vmatpush.bf16.msra.mxu3 %v434_v9 }
  0x46   : > { %985 = vmatmul.msk.bf16.vlgmr.msra.gmra.mxu0 %vm517_vm11, %v1003_v16  ;;  %989 = vmatmul.msk.bf16.vlgmr.msra.gmra.mxu1 %vm517_vm11, %v1007_v17 }
  0x47   : > { %993 = vmatmul.msk.bf16.vlgmr.msra.gmra.mxu2 %vm517_vm11, %v1011_v23  ;;  %997 = vmatmul.msk.bf16.vlgmr.msra.gmra.mxu3 %vm517_vm11, %v1015_v18 }
  0x56   : > { %986 = vmatmul.msk.bf16.gmra.mxu0 %vm517_vm11, %v1004_v20  ;;  %990 = vmatmul.msk.bf16.gmra.mxu1 %vm517_vm11, %v1008_v21 }
  0x57   : > { %994 = vmatmul.msk.bf16.gmra.mxu2 %vm517_vm11, %v1012_v22  ;;  %998 = vmatmul.msk.bf16.gmra.mxu3 %vm517_vm11, %v1016_v24 }
  0x66   : > { %987 = vmatmul.msk.bf16.gmra.mxu0 %vm517_vm11, %v1005_v25  ;;  %991 = vmatmul.msk.bf16.gmra.mxu1 %vm517_vm11, %v1009_v26 }
  0x67   : > { %995 = vmatmul.msk.bf16.gmra.mxu2 %vm517_vm11, %v1013_v27  ;;  %999 = vmatmul.msk.bf16.gmra.mxu3 %vm517_vm11, %v1017_v28 }
  0x76   : > { %988 = vmatmul.msk.bf16.gmra.mxu0 %vm517_vm11, %v1006_v29  ;;  %992 = vmatmul.msk.bf16.gmra.mxu1 %vm517_vm11, %v1010_v30 }
  0x77   : > { %996 = vmatmul.msk.bf16.gmra.mxu2 %vm517_vm11, %v1014_v31  ;;  %1000 = vmatmul.msk.bf16.gmra.mxu3 %vm517_vm11, %v1018_v32 }
  0xc3   : > { %v579_v33 = vpop.f32.mrf.mxu0  ;;  %v599_v34 = vpop.f32.mrf.mxu1 }
  0xc4   : > { %758 = vst [vmem:[%s1382_s29] sm:$0xff] %v579_v33 }
  0xc5   : > { %766 = vst [vmem:[%s1382_s29 + $0x40] sm:$0xff] %v599_v34 }
  0xca   : > { %v619_v35 = vpop.f32.mrf.mxu2  ;;  %v639_v36 = vpop.f32.mrf.mxu3 }
  0xcb   : > { %774 = vst [vmem:[%s1382_s29 + $0x80] sm:$0xff] %v619_v35  ;;  %v581_v37 = vpop.f32.mrf.mxu0  ;;  %v601_v38 = vpop.f32.mrf.mxu1 }
  0xcc   : > { %782 = vst [vmem:[%s1382_s29 + $0xc0] sm:$0xff] %v639_v36 }
  0xcd   : > { %759 = vst [vmem:[%s1382_s29 + $0x8] sm:$0xff] %v581_v37 }
  0xce   : > { %767 = vst [vmem:[%s1382_s29 + $0x48] sm:$0xff] %v601_v38 }
  0xd2   : > { %v621_v39 = vpop.f32.mrf.mxu2  ;;  %v641_v40 = vpop.f32.mrf.mxu3 }
  0xd3   : > { %775 = vst [vmem:[%s1382_s29 + $0x88] sm:$0xff] %v621_v39  ;;  %v584_v41 = vpop.f32.mrf.mxu0  ;;  %v604_v42 = vpop.f32.mrf.mxu1 }
  0xd4   : > { %783 = vst [vmem:[%s1382_s29 + $0xc8] sm:$0xff] %v641_v40 }
  0xd5   : > { %760 = vst [vmem:[%s1382_s29 + $0x10] sm:$0xff] %v584_v41 }
  0xd6   : > { %768 = vst [vmem:[%s1382_s29 + $0x50] sm:$0xff] %v604_v42 }
  0xda   : > { %v624_v43 = vpop.f32.mrf.mxu2  ;;  %v644_v44 = vpop.f32.mrf.mxu3 }
  0xdb   : > { %776 = vst [vmem:[%s1382_s29 + $0x90] sm:$0xff] %v624_v43  ;;  %v586_v10 = vpop.f32.mrf.mxu0  ;;  %v606_v45 = vpop.f32.mrf.mxu1 }
  0xdc   : > { %784 = vst [vmem:[%s1382_s29 + $0xd0] sm:$0xff] %v644_v44 }
  0xdd   : > { %761 = vst [vmem:[%s1382_s29 + $0x18] sm:$0xff] %v586_v10 }
  0xde   : > { %769 = vst [vmem:[%s1382_s29 + $0x58] sm:$0xff] %v606_v45 }
  0xe2   : > { %v626_v46 = vpop.f32.mrf.mxu2  ;;  %v646_v47 = vpop.f32.mrf.mxu3 }
  0xe3   : > { %777 = vst [vmem:[%s1382_s29 + $0x98] sm:$0xff] %v626_v46  ;;  %v589_v48 = vpop.f32.mrf.mxu0  ;;  %v609_v49 = vpop.f32.mrf.mxu1 }
  0xe4   : > { %785 = vst [vmem:[%s1382_s29 + $0xd8] sm:$0xff] %v646_v47 }
  0xe5   : > { %762 = vst [vmem:[%s1382_s29 + $0x20] sm:$0xff] %v589_v48 }
  0xe6   : > { %770 = vst [vmem:[%s1382_s29 + $0x60] sm:$0xff] %v609_v49 }
  0xea   : > { %v629_v50 = vpop.f32.mrf.mxu2  ;;  %v649_v51 = vpop.f32.mrf.mxu3 }
  0xeb   : > { %778 = vst [vmem:[%s1382_s29 + $0xa0] sm:$0xff] %v629_v50  ;;  %v591_v52 = vpop.f32.mrf.mxu0  ;;  %v611_v15 = vpop.f32.mrf.mxu1 }
  0xec   : > { %786 = vst [vmem:[%s1382_s29 + $0xe0] sm:$0xff] %v649_v51 }
  0xed   : > { %763 = vst [vmem:[%s1382_s29 + $0x28] sm:$0xff] %v591_v52 }
  0xee   : > { %771 = vst [vmem:[%s1382_s29 + $0x68] sm:$0xff] %v611_v15 }
  0xf2   : > { %v631_v53 = vpop.f32.mrf.mxu2  ;;  %v651_v54 = vpop.f32.mrf.mxu3 }
  0xf3   : > { %779 = vst [vmem:[%s1382_s29 + $0xa8] sm:$0xff] %v631_v53  ;;  %v594_v55 = vpop.f32.mrf.mxu0  ;;  %v614_v56 = vpop.f32.mrf.mxu1 }
  0xf4   : > { %787 = vst [vmem:[%s1382_s29 + $0xe8] sm:$0xff] %v651_v54 }
  0xf5   : > { %764 = vst [vmem:[%s1382_s29 + $0x30] sm:$0xff] %v594_v55 }
  0xf6   : > { %772 = vst [vmem:[%s1382_s29 + $0x70] sm:$0xff] %v614_v56 }
  0xfa   : > { %v634_v57 = vpop.f32.mrf.mxu2  ;;  %v654_v58 = vpop.f32.mrf.mxu3 }
  0xfb   : > { %780 = vst [vmem:[%s1382_s29 + $0xb0] sm:$0xff] %v634_v57  ;;  %v596_v59 = vpop.f32.mrf.mxu0  ;;  %v616_v60 = vpop.f32.mrf.mxu1 }
  0xfc   : > { %788 = vst [vmem:[%s1382_s29 + $0xf0] sm:$0xff] %v654_v58 }
  0xfd   : > { %765 = vst [vmem:[%s1382_s29 + $0x38] sm:$0xff] %v596_v59 }
  0xfe   : > { %773 = vst [vmem:[%s1382_s29 + $0x78] sm:$0xff] %v616_v60 }
 0x102   : > { %v636_v61 = vpop.f32.mrf.mxu2  ;;  %v656_v62 = vpop.f32.mrf.mxu3 }
 0x103   : > { %781 = vst [vmem:[%s1382_s29 + $0xb8] sm:$0xff] %v636_v61 }
 0x104   : > { %789 = vst [vmem:[%s1382_s29 + $0xf8] sm:$0xff] %v656_v62 }
 0x105 PF: > { %s14_s14 = sadd.s32 1, %s1184_s14   ;;  %s1443_s12 = smov %s1180_s13 }
 0x106   : > { %p11_p8 = scmp.ge.s32.totalorder %s14_s14, 4   ;;  %s1444_s13 = smov %s1446_s16 }
 0x108   :  { %13 = sbr.rel (!%p11_p8) target bundleno = 2 (0x2), region = 79 }
 0x10d   :  { %818 = vsyncpa [#allocation4], 1 }
 0x10e   :  { %820 = vsyncpa [#allocation4 + $0x1], 1 }

</bundles_post_ra>
